<compile_context>
chip_gen: v5e
topology: v5e:2x2
jax: 0.10.0
libtpu: 0.0.40
codegen_flags: <defaults>
</compile_context>

<pallas_src>
import jax
import jax.numpy as jnp
from jax.experimental import pallas as pl
from jax.experimental.pallas import tpu as pltpu


_LANES = 128                             # vreg lane width
_MAX_UNROLL_CHUNKS = 64                  # static-unroll threshold for chunk loop
_LANE_CAP = 4096                         # max auto time tile (bounds the unroll)
_TARGET_BLOCK_BYTES = 4 * 1024 * 1024    # per-grid-step byte target


def _vmem_capacity_bytes():
    """Physical VMEM per TensorCore; conservative fallback if unqueryable."""
    try:
        info = pltpu.get_tpu_info()
        cap = getattr(info, "vmem_capacity_bytes", None)
        if cap:
            return int(cap)
    except Exception:
        pass
    return 64 * 1024 * 1024  # v7x per-core size: safe lower bound everywhere


def _make_gsp_kernel(*, T: int, tile_t: int, acc_lanes: int, grid_t: int):
    inv_t = 1.0 / T
    inv_tm1 = 1.0 / (T - 1)
    last_valid = T - (grid_t - 1) * tile_t   # valid lanes in the final tile (static)
    ragged = last_valid != tile_t

    def accum(x_ref, sum_ref, sumsq_ref, n_lanes):
        # Lane-parallel accumulation of the first `n_lanes` (static) time lanes
        # of this tile into (tile_b, tile_c, acc_lanes) accumulators.
        n_full, rem = divmod(n_lanes, acc_lanes)
        if n_full > 0:
            if n_full <= _MAX_UNROLL_CHUNKS:
                for k in range(n_full):
                    off = k * acc_lanes
                    chunk = x_ref[:, :, off:off + acc_lanes].astype(jnp.float32)
                    sum_ref[...] += chunk
                    sumsq_ref[...] += chunk * chunk
            else:
                # Only reachable with exotic user-specified tile_t.
                def body(k, carry):
                    off = pl.multiple_of(k * acc_lanes, acc_lanes)
                    chunk = x_ref[:, :, pl.ds(off, acc_lanes)].astype(jnp.float32)
                    sum_ref[...] += chunk
                    sumsq_ref[...] += chunk * chunk
                    return carry
                jax.lax.fori_loop(0, n_full, body, 0)
        if rem:
            off = n_full * acc_lanes
            chunk = x_ref[:, :, off:off + rem].astype(jnp.float32)
            sum_ref[:, :, :rem] += chunk
            sumsq_ref[:, :, :rem] += chunk * chunk

    def kernel(x_ref, out_ref, sum_ref, sumsq_ref):
        # x_ref:     (tile_b, tile_c, tile_t)      input tile
        # out_ref:   (tile_b, 2, tile_c)           [mean row | std row]
        # sum_ref:   (tile_b, tile_c, acc_lanes)   lane-parallel sum(x)
        # sumsq_ref: (tile_b, tile_c, acc_lanes)   lane-parallel sum(x^2)
        t = pl.program_id(2)
        last = pl.num_programs(2) - 1

        @pl.when(t == 0)
        def _init():
            sum_ref[...] = jnp.zeros_like(sum_ref)
            sumsq_ref[...] = jnp.zeros_like(sumsq_ref)

        if grid_t == 1:
            accum(x_ref, sum_ref, sumsq_ref, T)
        elif not ragged:
            accum(x_ref, sum_ref, sumsq_ref, tile_t)
        else:
            # Steady-state tiles are fully valid -> no masking on the hot path.
            @pl.when(t < last)
            def _steady():
                accum(x_ref, sum_ref, sumsq_ref, tile_t)

            # Last tile: only `last_valid` lanes are real data (Pallas pads the
            # rest with unspecified values), handled with static slices.
            @pl.when(t == last)
            def _tail():
                accum(x_ref, sum_ref, sumsq_ref, last_valid)

        @pl.when(t == last)
        def _finalize():
            # Single cross-lane (XLU) reduce over the accumulator lanes.
            s = jnp.sum(sum_ref[...], axis=-1)        # (tile_b, tile_c)
            ss = jnp.sum(sumsq_ref[...], axis=-1)     # (tile_b, tile_c)
            mean = s * jnp.float32(inv_t)
            # Unbiased variance: (sum(x^2) - sum(x)*mean) / (T - 1).
            var = (ss - s * mean) * jnp.float32(inv_tm1)
            var = jnp.maximum(var, jnp.float32(0.0))  # guard tiny cancellation
            std = jnp.sqrt(var + jnp.float32(1e-7))
            out_ref[:, 0, :] = mean.astype(out_ref.dtype)
            out_ref[:, 1, :] = std.astype(out_ref.dtype)

    return kernel


def gsp(x, *, tile_t=None, tile_b=None):
    """Global statistics pooling.  x: (B, ..., T) -> (B, 2 * prod(middle dims))."""
    if x.ndim < 2:
        raise ValueError(f"GSP expects rank >= 2, got shape {x.shape}")
    B = x.shape[0]
    T = x.shape[-1]
    C = 1
    for d in x.shape[1:-1]:
        C *= d
    if C < 1:
        raise ValueError("GSP needs at least one channel")
    if T < 2:
        # torch.var(correction=1) would divide by zero (inf/NaN); fail loudly.
        raise ValueError("GSP requires T >= 2 for the unbiased variance.")
    x3 = x.reshape(B, C, T)
    itemsize = jnp.dtype(x.dtype).itemsize

    # Generation-aware VMEM sizing: scoped limit ~3/4 of physical per-core VMEM
    # (-> ~96 MiB on v5e/v6e, ~48 MiB on v7x); the pipeline (double-buffered
    # input tile + both accumulators) targets half of that limit.
    vmem_cap = _vmem_capacity_bytes()
    vmem_limit = int(min((vmem_cap * 3) // 4, 112 * 1024 * 1024))
    pipe_budget = vmem_limit // 2

    # Channel split: with B == 1 (inference) there would be < 2 units of
    # "parallel" grid work, leaving one v7x TensorCore idle.  Per-channel stats
    # are independent, so split C into 128-multiples (output stays lane-legal).
    tile_c = C
    if B == 1 and C >= 256:
        cand = ((-(-C // 2) + _LANES - 1) // _LANES) * _LANES
        if cand < C:
            tile_c = cand
    grid_c = pl.cdiv(C, tile_c)

    # Time tile: full T if it fits, else the biggest 128-multiple under the
    # per-row budget, capped so the in-kernel chunk loop stays a bounded unroll.
    if tile_t is None:
        row_bytes = max(1, tile_c * itemsize)
        max_t = pipe_budget // (2 * row_bytes)
        max_t = max(_LANES, (max_t // _LANES) * _LANES)
        lane_cap = min(max_t, _LANE_CAP)
        tile_t = T if T <= lane_cap else lane_cap
    else:
        tile_t = min(int(tile_t), T)
        if tile_t < T:
            tile_t = min(T, max(_LANES, ((tile_t + _LANES - 1) // _LANES) * _LANES))
    grid_t = pl.cdiv(T, tile_t)
    acc_lanes = min(_LANES, tile_t)

    # Batch tile: grow until the block reaches the byte target (or budget /
    # batch exhausted) to amortize per-grid-step overhead, while keeping at
    # least 2 parallel grid steps when B >= 2 (megacore load balance).
    block_bytes = max(1, tile_c * tile_t * itemsize)
    acc_bytes = 2 * tile_c * acc_lanes * 4
    if tile_b is None:
        per_b = 2 * block_bytes + acc_bytes
        max_b = max(1, pipe_budget // per_b)
        want_b = max(1, -(-_TARGET_BLOCK_BYTES // block_bytes))
        tile_b = min(B, max_b, want_b, 8)
        if B >= 2:
            tile_b = min(tile_b, max(1, B // 2))
    tile_b = max(1, min(int(tile_b), B))
    grid_b = pl.cdiv(B, tile_b)

    kernel = _make_gsp_kernel(T=T, tile_t=tile_t, acc_lanes=acc_lanes, grid_t=grid_t)

    out = pl.pallas_call(
        kernel,
        out_shape=jax.ShapeDtypeStruct((B, 2, C), x.dtype),
        grid=(grid_b, grid_c, grid_t),
        in_specs=[pl.BlockSpec((tile_b, tile_c, tile_t), lambda b, c, t: (b, c, t))],
        # Output block constant across the T axis -> resident accumulator slab,
        # written only at the final T step; lane-dense along C (no concat).
        out_specs=pl.BlockSpec((tile_b, 2, tile_c), lambda b, c, t: (b, 0, c)),
        scratch_shapes=[
            pltpu.VMEM((tile_b, tile_c, acc_lanes), jnp.float32),   # sum(x)
            pltpu.VMEM((tile_b, tile_c, acc_lanes), jnp.float32),   # sum(x^2)
        ],
        compiler_params=pltpu.CompilerParams(
            dimension_semantics=("parallel", "parallel", "arbitrary"),
            vmem_limit_bytes=vmem_limit,
        ),
    )(x3)
    return out.reshape(B, 2 * C)


def gsp_reference(x):
    """Pure-JAX reference matching the PyTorch forward exactly."""
    mean = jnp.mean(x, axis=-1)
    var = jnp.var(x, axis=-1, ddof=1)     # torch.var is unbiased by default
    std = jnp.sqrt(var + 1e-7)
    mean = mean.reshape(mean.shape[0], -1)
    std = std.reshape(std.shape[0], -1)
    return jnp.concatenate([mean, std], axis=1)


if __name__ == "__main__":
    key = jax.random.PRNGKey(0)
    k1, k2, k3 = jax.random.split(key, 3)

    # Case 1: small shape, single time tile (block == full array).
    B, C, T = 2, 4, 16
    x = jax.random.normal(k1, (B, C, T), dtype=jnp.float32)
    out = jax.block_until_ready(gsp(x))
    ref = gsp_reference(x)
    assert out.shape == (B, 2 * C), out.shape
    assert jnp.allclose(out, ref, atol=1e-5, rtol=1e-5), (out, ref)

    # Case 2: tiled time axis with a ragged (statically-sliced) last tile,
    # exercising the lane-parallel accumulators.
    B2, C2, T2 = 2, 8, 400
    x2 = jax.random.normal(k2, (B2, C2, T2), dtype=jnp.float32) * 3.0 + 1.5
    out2 = jax.block_until_ready(gsp(x2, tile_t=128))   # 400 = 3*128 + 16
    ref2 = gsp_reference(x2)
    assert out2.shape == (B2, 2 * C2), out2.shape
    assert jnp.allclose(out2, ref2, atol=1e-4, rtol=1e-4), (out2, ref2)

    # Case 3: B == 1 inference path -> channel-split parallel axis (v7x 2 TCs),
    # plus a remainder lane chunk (200 = 128 + 72).
    B3, C3, T3 = 1, 256, 200
    x3 = jax.random.normal(k3, (B3, C3, T3), dtype=jnp.float32) - 0.5
    out3 = jax.block_until_ready(gsp(x3))
    ref3 = gsp_reference(x3)
    assert out3.shape == (B3, 2 * C3), out3.shape
    assert jnp.allclose(out3, ref3, atol=1e-4, rtol=1e-4), (out3, ref3)

    print("KERNEL_OK")
</pallas_src>

<mosaic_0001>
module attributes {stable_mosaic.version = 11 : i64} {
  func.func @kernel(%arg0: i32, %arg1: i32, %arg2: i32, %arg3: memref<1x4x16xf32, #tpu.memory_space<vmem>>, %arg4: memref<1x2x4xf32, #tpu.memory_space<vmem>>, %arg5: memref<1x4x16xf32, #tpu.memory_space<vmem>>, %arg6: memref<1x4x16xf32, #tpu.memory_space<vmem>>) attributes {dimension_semantics = [#tpu.dimension_semantics<parallel>, #tpu.dimension_semantics<parallel>, #tpu.dimension_semantics<arbitrary>], iteration_bounds = array<i64: 2, 1, 1>, scalar_prefetch = 0 : i64, scratch_operands = 2 : i64, tpu.core_type = #tpu.core_type<tc>, window_params = [{transform_indices = @transform_0, window_bounds = array<i64: 1, 4, 16>}, {transform_indices = @transform_1, window_bounds = array<i64: 1, 2, 4>}]} {
    %c0_i32 = arith.constant 0 : i32
    %0 = arith.cmpi eq, %arg2, %c0_i32 : i32
    %1 = arith.extui %0 : i1 to i32
    %c0_i32_0 = arith.constant 0 : i32
    %2 = arith.cmpi ne, %1, %c0_i32_0 : i32
    scf.if %2 {
      %cst = arith.constant 0.000000e+00 : f32
      %14 = vector.broadcast %cst : f32 to vector<1x4x16xf32>
      %c0_17 = arith.constant 0 : index
      %c0_18 = arith.constant 0 : index
      %c0_19 = arith.constant 0 : index
      %15 = vector.load %arg5[%c0_17, %c0_18, %c0_19] : memref<1x4x16xf32, #tpu.memory_space<vmem>>, vector<1x4x16xf32>
      tpu.vector_store %arg5[%c0_17, %c0_18, %c0_19], %14 {strides = array<i32>} : memref<1x4x16xf32, #tpu.memory_space<vmem>>, vector<1x4x16xf32>,
      %cst_20 = arith.constant 0.000000e+00 : f32
      %16 = vector.broadcast %cst_20 : f32 to vector<1x4x16xf32>
      %c0_21 = arith.constant 0 : index
      %c0_22 = arith.constant 0 : index
      %c0_23 = arith.constant 0 : index
      %17 = vector.load %arg6[%c0_21, %c0_22, %c0_23] : memref<1x4x16xf32, #tpu.memory_space<vmem>>, vector<1x4x16xf32>
      tpu.vector_store %arg6[%c0_21, %c0_22, %c0_23], %16 {strides = array<i32>} : memref<1x4x16xf32, #tpu.memory_space<vmem>>, vector<1x4x16xf32>,
    } else {
    }
    %c0 = arith.constant 0 : index
    %c0_1 = arith.constant 0 : index
    %c0_2 = arith.constant 0 : index
    %3 = vector.load %arg3[%c0, %c0_1, %c0_2] : memref<1x4x16xf32, #tpu.memory_space<vmem>>, vector<1x4x16xf32>
    %c0_3 = arith.constant 0 : index
    %c0_4 = arith.constant 0 : index
    %c0_5 = arith.constant 0 : index
    %4 = vector.load %arg5[%c0_3, %c0_4, %c0_5] : memref<1x4x16xf32, #tpu.memory_space<vmem>>, vector<1x4x16xf32>
    %5 = arith.addf %4, %3 : vector<1x4x16xf32>
    %c0_6 = arith.constant 0 : index
    %c0_7 = arith.constant 0 : index
    %c0_8 = arith.constant 0 : index
    %6 = vector.load %arg5[%c0_6, %c0_7, %c0_8] : memref<1x4x16xf32, #tpu.memory_space<vmem>>, vector<1x4x16xf32>
    tpu.vector_store %arg5[%c0_6, %c0_7, %c0_8], %5 {strides = array<i32>} : memref<1x4x16xf32, #tpu.memory_space<vmem>>, vector<1x4x16xf32>,
    %c0_9 = arith.constant 0 : index
    %c0_10 = arith.constant 0 : index
    %c0_11 = arith.constant 0 : index
    %7 = vector.load %arg6[%c0_9, %c0_10, %c0_11] : memref<1x4x16xf32, #tpu.memory_space<vmem>>, vector<1x4x16xf32>
    %8 = arith.mulf %3, %3 : vector<1x4x16xf32>
    %9 = arith.addf %7, %8 : vector<1x4x16xf32>
    %c0_12 = arith.constant 0 : index
    %c0_13 = arith.constant 0 : index
    %c0_14 = arith.constant 0 : index
    %10 = vector.load %arg6[%c0_12, %c0_13, %c0_14] : memref<1x4x16xf32, #tpu.memory_space<vmem>>, vector<1x4x16xf32>
    tpu.vector_store %arg6[%c0_12, %c0_13, %c0_14], %9 {strides = array<i32>} : memref<1x4x16xf32, #tpu.memory_space<vmem>>, vector<1x4x16xf32>,
    %c0_i32_15 = arith.constant 0 : i32
    %11 = arith.cmpi eq, %arg2, %c0_i32_15 : i32
    %12 = arith.extui %11 : i1 to i32
    %c0_i32_16 = arith.constant 0 : i32
    %13 = arith.cmpi ne, %12, %c0_i32_16 : i32
    scf.if %13 {
      %c0_17 = arith.constant 0 : index
      %c0_18 = arith.constant 0 : index
      %c0_19 = arith.constant 0 : index
      %14 = vector.load %arg5[%c0_17, %c0_18, %c0_19] : memref<1x4x16xf32, #tpu.memory_space<vmem>>, vector<1x4x16xf32>
      %cst = arith.constant dense<0.000000e+00> : vector<1x4xf32>
      %15 = vector.multi_reduction <add>, %14, %cst [2] : vector<1x4x16xf32> to vector<1x4xf32>
      %c0_20 = arith.constant 0 : index
      %c0_21 = arith.constant 0 : index
      %c0_22 = arith.constant 0 : index
      %16 = vector.load %arg6[%c0_20, %c0_21, %c0_22] : memref<1x4x16xf32, #tpu.memory_space<vmem>>, vector<1x4x16xf32>
      %cst_23 = arith.constant dense<0.000000e+00> : vector<1x4xf32>
      %17 = vector.multi_reduction <add>, %16, %cst_23 [2] : vector<1x4x16xf32> to vector<1x4xf32>
      %cst_24 = arith.constant 6.250000e-02 : f32
      %18 = vector.broadcast %cst_24 : f32 to vector<1x4xf32>
      %19 = arith.mulf %15, %18 : vector<1x4xf32>
      %20 = arith.mulf %15, %19 : vector<1x4xf32>
      %21 = arith.subf %17, %20 : vector<1x4xf32>
      %cst_25 = arith.constant 0.0666666701 : f32
      %22 = vector.broadcast %cst_25 : f32 to vector<1x4xf32>
      %23 = arith.mulf %21, %22 : vector<1x4xf32>
      %cst_26 = arith.constant 0.000000e+00 : f32
      %24 = vector.broadcast %cst_26 : f32 to vector<1x4xf32>
      %25 = arith.maximumf %23, %24 : vector<1x4xf32>
      %cst_27 = arith.constant 1.000000e-07 : f32
      %26 = vector.broadcast %cst_27 : f32 to vector<1x4xf32>
      %27 = arith.addf %25, %26 : vector<1x4xf32>
      %28 = math.sqrt %27 : vector<1x4xf32>
      %c0_28 = arith.constant 0 : index
      %c0_29 = arith.constant 0 : index
      %c0_30 = arith.constant 0 : index
      %29 = vector.load %arg4[%c0_28, %c0_29, %c0_30] : memref<1x2x4xf32, #tpu.memory_space<vmem>>, vector<1x1x4xf32>
      %30 = vector.shape_cast %29 : vector<1x1x4xf32> to vector<1x4xf32>
      %31 = vector.shape_cast %19 : vector<1x4xf32> to vector<1x1x4xf32>
      tpu.vector_store %arg4[%c0_28, %c0_29, %c0_30], %31 {strides = array<i32>} : memref<1x2x4xf32, #tpu.memory_space<vmem>>, vector<1x1x4xf32>,
      %c0_31 = arith.constant 0 : index
      %c1 = arith.constant 1 : index
      %c0_32 = arith.constant 0 : index
      %32 = vector.load %arg4[%c0_31, %c1, %c0_32] : memref<1x2x4xf32, #tpu.memory_space<vmem>>, vector<1x1x4xf32>
      %33 = vector.shape_cast %32 : vector<1x1x4xf32> to vector<1x4xf32>
      %34 = vector.shape_cast %28 : vector<1x4xf32> to vector<1x1x4xf32>
      tpu.vector_store %arg4[%c0_31, %c1, %c0_32], %34 {strides = array<i32>} : memref<1x2x4xf32, #tpu.memory_space<vmem>>, vector<1x1x4xf32>,
    } else {
    }
    return
  }
  func.func @transform_0(%arg0: i32, %arg1: i32, %arg2: i32) -> (i32, i32, i32) {
    %c0_i32 = arith.constant 0 : i32
    return %arg0, %arg1, %arg2 : i32, i32, i32
  }
  func.func @transform_1(%arg0: i32, %arg1: i32, %arg2: i32) -> (i32, i32, i32) {
    %c0_i32 = arith.constant 0 : i32
    %c0_i32_0 = arith.constant 0 : i32
    return %arg0, %c0_i32, %arg1 : i32, i32, i32
  }
}

</mosaic_0001>

<bundles_post_ra>
// kernel: tpu_custom_call.1
= control target key start
LH: loop header
LB: loop body
LE: loop exit
PB: predicated region body
PF: predicated region fallthrough
CT: control target
= control target key end

     0   :  { %6 = vsyncpa [#allocation5], 0  ;;  %s650_s0 = inlined_call_operand.hbm [shape: f32[2,4,16], index: 0, kind: input, shape index: {}]   ;;  %s651_s1 = inlined_call_operand.hbm [shape: f32[2,2,4], index: 1, kind: output, shape index: {}]  }
   0x1   :  { %8 = vsyncpa [#allocation5 + $0x1], 0 }
   0x2   :  { %9 = vsyncpa [#allocation6], 0 }
   0x3   :  { %11 = vsyncpa [#allocation6 + $0x1], 0  ;;  %s521_s6 = smov 0   ;;  %s523_s7 = smov 0  }
   0x4   :  { %s525_s8 = smov 0   ;;  %s527_s9 = smov 0  }
   0x5   :  { %s529_s10 = smov 0   ;;  %s531_s11 = smov 0  }
   0x6 LB: > { %s318_s12 = sadd.s32 4294967295, %s508_s11   ;;  %s319_s13 = sadd.s32 4294967294, %s508_s11   ;;  %s508_s11 = sphi %s531_s11, %s17_s11   ;;  %s504_s10 = sphi %s529_s10, %s660_s10   ;;  %s500_s9 = sphi %s527_s9, %s659_s9   ;;  %s496_s8 = sphi %s525_s8, %s658_s8   ;;  %s492_s7 = sphi %s523_s7, %s657_s7   ;;  %s488_s6 = sphi %s521_s6, %s656_s6  }
   0x7   : > { %s36_s14 = sadd.s32 1, %s504_s10  ;;  %s47_s15 = sadd.s32 1, %s496_s8 }
   0x8   : > { %p38_p0 = scmp.ge.s32.totalorder %s36_s14, 2  ;;  %p54_p1 = scmp.ne.s32.totalorder %s496_s8, %s492_s7 }
   0x9   : > { %p55_p2 = scmp.eq.s32.totalorder %s508_s11, 0  ;;  %p60_p3 = scmp.ne.s32.totalorder %s492_s7, %s488_s6 }
   0xa   : > { %s662_s14 = smov (%p38_p0, %s36_s14), 0  ;;  %p61_p5 = scmp.eq.s32.totalorder %s318_s12, 0 }
   0xb   : > { %p562_p4 = por %p55_p2, %p54_p1  ;;  %s40_s17 = ssub.s32 %s504_s10, %s662_s14 }
   0xc   : > { %p86_p6 = scmp.eq.s32.totalorder %s318_s12, 1  ;;  %p45_p7 = scmp.eq.s32.totalorder %s40_s17, 0 }
   0xd   : > { %p568_p8 = por %p61_p5, %p60_p3  ;;  %p92_p10 = scmp.eq.s32.totalorder %s319_s13, 1 }
   0xe   : > { %p572_p9 = por %p86_p6, %p54_p1  ;;  %p321_p12 = scmp.ge.s32.totalorder %s508_s11, 2 }
   0xf   : > { %s577_s20 = scalar_select %p45_p7, %s496_s8, %s47_s15  }
  0x10   : > { %p579_p11 = por %p92_p10, %p60_p3  ;;  %p343_p13 = scmp.lt.s32.totalorder %s508_s11, 2 }
  0x11   : > { %s112_s22 = sand.u32 1, %s496_s8   ;;  %s323_s24 = sshll.u32 %s504_s10, 2 }
  0x12   : > { %s322_s23 = sshll.u32 %s112_s22, 2  ;;  %s122_s27 = scalar_lea.hbm %s650_s0, %s323_s24 }
  0x13   : > { %s116_s28 = scalar_lea.vmem [#allocation4], %s322_s23  ;;  %s124_s30 = sshll.u32 %s122_s27, 4  ;;  %s125_s30 = int_to_ptr.hbm [resolvable:$true] %s124_s30 }
  0x14   : > { %s126_s29 = sshll.u32 %s116_s28, 4  ;;  %p336_p0 = pnand %p343_p13, %p562_p4  ;;  %s127_s29 = int_to_ptr.vmem [resolvable:$true] %s126_s29 }
  0x15   : > { %p324_p1 = scmp.ge.s32.totalorder %s508_s11, 1  ;;  %p131_p2 = scmp.lt.s32.totalorder %s508_s11, 3 }
  0x16   : > { %s113_s2 = scalar_lea.sflag [#allocation5], %s112_s22 }
  0x17   : > { %338 = dma.hbm_to_vmem [thread:$0]  (!%p336_p0), %s125_s30, 64, %s127_s29, %s113_s2  }
  0x18   : > { %p132_p3 = pnand %p324_p1, %p131_p2 }
  0x19   : > { %s595_s3 = sand.u32 (!%p132_p3), 1, %s492_s7  }
  0x1a   : > { %135 = sbr.rel (%p132_p3) target bundleno = 210 (0xd2), region = 24  ;;  %s325_s4 = sshll.u32 (!%p132_p3), %s595_s3, 2 }
  0x1b   : > { %s138_s5 = scalar_lea.sflag (!%p132_p3), [#allocation5], %s595_s3  ;;  %s141_s12 = scalar_lea.vmem (!%p132_p3), [#allocation4], %s325_s4 }
  0x1f   : > { %479 = dma.done.wait (%p568_p8), %s138_s5, 64  }
  0x20   : > { %481 = vsyncadd (%p568_p8), %s138_s5, 4294967232  ;;  %vm165_vm0 = vcmask 125952   ;;  %v510_v0 = vmov 0.0   ;;  %v168_v1 = vld [vmem:[%s141_s12] sm:$0xf]  ;;  %v207_v11 = vlaneseq  ;;  %s326_s13 = sshll.u32 %s595_s3, 1 }
  0x21   : > { %166 = vst.msk [vmem:[#allocation2] sm:$0xf] %vm165_vm0, %v510_v0  ;;  %v174_v3 = vmul.f32 %v168_v1, %v168_v1  ;;  %vm211_vm1 = vcmask 24576   ;;  %s160_s15 = scalar_lea.vmem [#allocation7], %s326_s13  ;;  %s328_s16 = sshll.u32 %s500_s9, 1 }
  0x22   : > { %167 = vst.msk [vmem:[#allocation3] sm:$0xf] %vm165_vm0, %v510_v0  ;;  %v208_v12 = vand.u32 127, %v207_v11  ;;  %s229_s22 = scalar_lea.hbm %s651_s1, %s328_s16  ;;  %s231_s23 = sshll.u32 %s160_s15, 4  ;;  %s232_s23 = int_to_ptr.vmem [resolvable:$true] %s231_s23 }
  0x23   : > { %s233_s24 = sshll.u32 %s229_s22, 4  ;;  %s218_s9 = scalar_lea.sflag [#allocation6], %s595_s3  ;;  %s234_s24 = int_to_ptr.hbm [resolvable:$true] %s233_s24 }
  0x24   : > { %s440_s25 = sshra.s32 %s234_s24, 4  ;;  %s446_s29 = scalar_lea.hbm %s651_s1, 4  ;;  %s441_s25 = int_to_ptr.hbm [resolvable:$true] %s440_s25 }
  0x25   : > { %s442_s26 = scalar_lea.hbm %s441_s25, 2  ;;  %p447_p7 = scmp.lt.s32.totalorder %s441_s25, %s651_s1 }
  0x26   : > { %p443_p4 = scmp.ne.s32.totalorder %s441_s25, %s442_s26  ;;  %p448_p8 = scmp.lt.s32.totalorder %s446_s29, %s442_s26 }
  0x28   : > { %v169_v2 = vld [vmem:[#allocation2] sm:$0xf]  ;;  %p444_p5 = pnand %p443_p4, %p572_p9  ;;  %p449_p10 = por %p448_p8, %p447_p7 }
  0x29   : > { %v170_v4 = vadd.f32 %v169_v2, %v168_v1  ;;  %v173_v5 = vld [vmem:[#allocation3] sm:$0xf] }
  0x2a   : > { %v175_v6 = vadd.f32 %v174_v3, %v173_v5  ;;  %p445_p6 = pneg %p444_p5 }
  0x2b   : > { %172 = vst.msk [vmem:[#allocation2] sm:$0xf] %vm165_vm0, %v170_v4 }
  0x2c   : > { %176 = vst.msk [vmem:[#allocation3] sm:$0xf] %vm165_vm0, %v175_v6  ;;  %p450_p13 = pnand %p449_p10, %p445_p6 }
  0x32   : > { %v180_v7 = vld [vmem:[#allocation2] sm:$0xf] }
  0x33   : > { %v181_v8 = vsel %vm165_vm0, %v180_v7, 0.0  ;;  %v184_v9 = vld [vmem:[#allocation3] sm:$0xf] }
  0x34   : > { %182 = vadd.xlane.f32.xlu0 %v181_v8  ;;  %v185_v10 = vsel %vm165_vm0, %v184_v9, 0.0 }
  0x3c   : > { %186 = vadd.xlane.f32.xlu0 %v185_v10 }
  0xa7   : > { %v183_v13 = vpop.xlane.xlu0 %182 }
  0xa8   : > { %v188_v14 = vmul.f32 0.0625, %v183_v13 }
  0xaa   : > { %v209_v15 = vperm.slane %v188_v14, %v208_v12  ;;  %v189_v16 = vmul.f32 %v188_v14, %v183_v13 }
  0xac   : > { %212 = vst.msk [vmem:[%s160_s15] sm:$0x1] %vm211_vm1, %v209_v15 }
  0xaf   : > { %v187_v17 = vpop.xlane.xlu0 %186 }
  0xb0   : > { %v190_v18 = vsub.f32 %v187_v17, %v189_v16 }
  0xb2   : > { %v191_v19 = vmul.f32 0.06666667, %v190_v18 }
  0xb4   : > { %v192_v20 = vmax.f32 %v191_v19, 0.0 }
  0xb6   : > { %v193_v21 = vadd.f32 1e-07, %v192_v20 }
  0xb8   : > { %394 = vrsqrt.f32 %v193_v21  ;;  %vm201_vm2 = vcmp.eq.f32.partialorder %v193_v21, inf  ;;  %v204_v29 = vand.u32 2147483648, %v193_v21  ;;  %vm203_vm3 = vcmp.eq.f32.partialorder %v193_v21, 0.0 }
  0xbe   : > { %v395_v22 = vpop.eup %394 }
  0xbf   : > { %v195_v23 = vmul.f32 %v395_v22, %v193_v21 }
  0xc1   : > { %v196_v24 = vmul.f32 %v395_v22, %v195_v23 }
  0xc3   : > { %v197_v25 = vmul.f32 0.5, %v196_v24 }
  0xc5   : > { %v198_v26 = vsub.f32 1.5, %v197_v25 }
  0xc7   : > { %v199_v27 = vmul.f32 %v395_v22, %v198_v26 }
  0xc9   : > { %v200_v28 = vmul.f32 %v199_v27, %v193_v21 }
  0xcb   : > { %v202_v30 = vsel %vm201_vm2, %v193_v21, %v200_v28 }
  0xcc   : > { %v205_v31 = vsel %vm203_vm3, %v204_v29, %v202_v30 }
  0xcd   : > { %v214_v32 = vperm.slane %v205_v31, %v208_v12 }
  0xcf   : > { %216 = vst.msk [vmem:[%s160_s15 + $0x1] sm:$0x1] %vm211_vm1, %v214_v32 }
  0xd0   : > { %453 = shalt.err (!%p450_p13)
}
  0xd1   : > { %333 = dma.vmem_to_hbm [thread:$0]  (%p572_p9), %s232_s23, 32, %s234_s24, %s218_s9  }
  0xd2 PF: > { %s245_s3 = sand.u32 1, %s488_s6   ;;  %p340_p0 = pnand %p321_p12, %p579_p11 }
  0xd3   : > { %s246_s4 = scalar_lea.sflag [#allocation6], %s245_s3 }
  0xd4   : > { %p341_p1 = pneg %p340_p0 }
  0xd6   : > { %483 = dma.done.wait (%p341_p1), %s246_s4, 32  }
  0xd7   : > { %485 = vsyncadd (%p341_p1), %s246_s4, 4294967264  ;;  %s17_s11 = sadd.s32 1, %s508_s11   ;;  %s656_s6 = smov %s492_s7 }
  0xd8   : > { %p14_p2 = scmp.ge.s32.totalorder %s17_s11, 4   ;;  %s657_s7 = smov %s496_s8 }
  0xd9   : > { %s658_s8 = smov %s577_s20  ;;  %s659_s9 = smov %s504_s10 }
  0xda   : > { %s660_s10 = smov %s662_s14  ;;  %16 = sbr.rel (!%p14_p2) target bundleno = 6 (0x6), region = 77 }
  0xdf   :  { %252 = vsyncpa [#allocation5], 1 }
  0xe0   :  { %254 = vsyncpa [#allocation5 + $0x1], 1 }
  0xe1   :  { %255 = vsyncpa [#allocation6], 1 }
  0xe2   :  { %257 = vsyncpa [#allocation6 + $0x1], 1 }

</bundles_post_ra>
